<compile_context>
chip_gen: v7x
topology: tpu7x:2x2x1
jax: 0.10.0
libtpu: 0.0.40
codegen_flags: <defaults>
</compile_context>

<pallas_src>
import jax
import jax.numpy as jnp
from jax.experimental import pallas as pl
from jax.experimental.pallas import tpu as pltpu

LANE = 128
SUBLANE = 8
VMEM_BUDGET = 48 * 1024 * 1024   # conservative: fits v7x's 64 MiB/TC
MAX_TM = 4096
MAX_TK = 2048


def _round_up(v, m):
    return (v + m - 1) // m * m


def _cdiv(a, b):
    return -(-a // b)


def _select_tiling(m, k, cout, in_bytes):
    """VMEM-budget-aware tile selection -> (cout_p, k_p, tk, tm, m_pad, vmem)."""
    cout_p = _round_up(cout, SUBLANE)
    # Lane-dense contraction dim; prefer 256-multiples (v6e/v7x 256-deep MXU)
    # when the real channel count is already large enough.
    k_align = 256 if k >= 256 else LANE
    k_p = _round_up(k, k_align)

    # K tile: largest multiple of 128 that divides k_p, capped at MAX_TK.
    tk = min(k_p, MAX_TK)
    tk -= tk % LANE
    while k_p % tk:
        tk -= LANE

    def vmem_bytes(tm_):
        patches = 2 * tk * tm_ * in_bytes        # double-buffered patch tile
        weights = 2 * cout_p * tk * in_bytes     # double-buffered weight tile
        outs = 2 * cout_p * tm_ * 4              # double-buffered f32 output
        acc = cout_p * tm_ * 4                   # f32 accumulator scratch
        return patches + weights + outs + acc + 2 * cout_p * 4

    # Largest lane tile under the VMEM budget (never below one vreg width).
    tm_cap = MAX_TM
    while tm_cap > LANE and vmem_bytes(tm_cap) > VMEM_BUDGET:
        tm_cap -= LANE

    m_p = _round_up(m, LANE)
    if m_p <= tm_cap:
        # Whole M fits in one tile; split in two (only when it stays
        # 128-aligned, i.e. adds no padding) so the "parallel" M axis can be
        # sharded across v7x's two TensorCores.
        tm = m_p // 2 if m_p % (2 * LANE) == 0 else m_p
    else:
        # Pick the tile count first and pad M up to a multiple of the tile
        # (padding <128 lanes/tile) instead of collapsing to tm=128 whenever
        # m_p has no large 128-multiple divisor.
        n = _cdiv(m_p, tm_cap)
        tm = _round_up(_cdiv(m_p, n), LANE)
    n_m = _cdiv(m_p, tm)
    m_pad = tm * n_m
    return cout_p, k_p, tk, tm, m_pad, vmem_bytes(tm)


# ---------------------------------------------------------------------------
# Pallas kernel: lane-dense MXU matmul, K-tiled with a resident f32 VMEM
# accumulator; bias is fused into the finalize step (full-width vst).
#   w_ref: (Cout_p, tk)  bf16   weight K-slab
#   p_ref: (tk,     tm)  bf16   im2col patch tile (M on the lane axis)
#   b_ref: (Cout_p, 1)   f32    bias, broadcast along lanes
#   o_ref: (Cout_p, tm)  f32    output tile
#   acc  : (Cout_p, tm)  f32    VMEM accumulator scratch
# ---------------------------------------------------------------------------
def _downsample_mm_kernel(w_ref, p_ref, b_ref, o_ref, acc_ref):
    k_idx = pl.program_id(1)

    @pl.when(k_idx == 0)
    def _():
        acc_ref[...] = jnp.zeros_like(acc_ref)

    acc_ref[...] += jnp.dot(w_ref[...], p_ref[...],
                            preferred_element_type=jnp.float32)

    @pl.when(k_idx == pl.num_programs(1) - 1)
    def _():
        o_ref[...] = acc_ref[...] + b_ref[...]


def downsample_forward(x, w, b, *, stride=2, padding=1):
    """PyTorch DownSample.forward == Conv2d(k=4, s=2, p=1). NCHW in / NCHW out."""
    bsz, cin, h, wd = x.shape
    cout, cin_w, kh, kw = w.shape
    assert cin == cin_w

    hp, wp = h + 2 * padding, wd + 2 * padding
    oh = (hp - kh) // stride + 1
    ow = (wp - kw) // stride + 1
    k = cin * kh * kw
    m = bsz * oh * ow

    in_dtype = jnp.bfloat16
    in_bytes = 2
    cout_p, k_p, tk, tm, m_pad, vmem_needed = _select_tiling(m, k, cout, in_bytes)
    cin_p = k_p // (kh * kw)   # apply the K padding on the small Cin axis

    # --- host glue (one XLA fusion): pad + im2col, already bf16 & K-padded ---
    xq = x.astype(in_dtype)
    xq = jnp.pad(xq, ((0, 0), (0, cin_p - cin),
                      (padding, padding), (padding, padding)))
    cols = []
    for i in range(kh):
        for j in range(kw):
            cols.append(xq[:, :,
                           i:i + stride * (oh - 1) + 1:stride,
                           j:j + stride * (ow - 1) + 1:stride])
    patches = jnp.stack(cols, axis=0)              # (kh*kw, B, Cin_p, oh, ow)
    patches = patches.transpose(2, 0, 1, 3, 4)     # (Cin_p, kh*kw, B, oh, ow)
    patches = patches.reshape(k_p, m)              # rows match w.reshape layout
    if m_pad != m:
        patches = jnp.pad(patches, ((0, 0), (0, m_pad - m)))

    w_p = jnp.pad(w, ((0, cout_p - cout), (0, cin_p - cin), (0, 0), (0, 0)))
    w_p = w_p.reshape(cout_p, k_p).astype(in_dtype)

    bias = b if b is not None else jnp.zeros((cout,), jnp.float32)
    b_p = jnp.pad(bias.astype(jnp.float32), (0, cout_p - cout)).reshape(cout_p, 1)

    grid = (m_pad // tm, k_p // tk)

    flops = 2 * cout_p * k_p * m_pad
    bytes_accessed = (in_bytes * (cout_p * k_p + k_p * m_pad)
                      + 4 * (cout_p + cout_p * m_pad))
    vmem_limit = int(min(VMEM_BUDGET, max(2 * vmem_needed, 8 * 1024 * 1024)))

    out_p = pl.pallas_call(
        _downsample_mm_kernel,
        out_shape=jax.ShapeDtypeStruct((cout_p, m_pad), jnp.float32),
        grid=grid,
        in_specs=[
            pl.BlockSpec((cout_p, tk), lambda mi, ki: (0, ki)),   # weights
            pl.BlockSpec((tk, tm), lambda mi, ki: (ki, mi)),      # patches
            pl.BlockSpec((cout_p, 1), lambda mi, ki: (0, 0)),     # bias
        ],
        out_specs=pl.BlockSpec((cout_p, tm), lambda mi, ki: (0, mi)),
        scratch_shapes=[pltpu.VMEM((cout_p, tm), jnp.float32)],
        compiler_params=pltpu.CompilerParams(
            dimension_semantics=("parallel", "arbitrary"),
            vmem_limit_bytes=vmem_limit,
        ),
        cost_estimate=pl.CostEstimate(
            flops=flops, transcendentals=0, bytes_accessed=bytes_accessed),
    )(w_p, patches, b_p)

    # TODO(synk): keep the (Cout, B*oh*ow) layout when fusing with the next
    # layer so this small output transpose disappears entirely.
    out = out_p[:cout, :m].reshape(cout, bsz, oh, ow).transpose(1, 0, 2, 3)
    return out


if __name__ == "__main__":
    key = jax.random.PRNGKey(0)
    kx, kw_, kb = jax.random.split(key, 3)

    B, CIN, H, W = 2, 4, 16, 16
    COUT = 8

    x = jax.random.normal(kx, (B, CIN, H, W), jnp.float32)
    w = 0.1 * jax.random.normal(kw_, (COUT, CIN, 4, 4), jnp.float32)
    b = 0.1 * jax.random.normal(kb, (COUT,), jnp.float32)

    fwd = jax.jit(lambda inp: downsample_forward(inp, w, b))
    y = fwd(x)
    jax.block_until_ready(y)

    # reference: XLA convolution (same semantics as torch Conv2d(k=4,s=2,p=1))
    y_ref = jax.lax.conv_general_dilated(
        x, w, window_strides=(2, 2), padding=((1, 1), (1, 1)),
        dimension_numbers=("NCHW", "OIHW", "NCHW")) + b.reshape(1, COUT, 1, 1)

    assert y.shape == (B, COUT, H // 2, W // 2)
    assert bool(jnp.all(jnp.isfinite(y)))
    # bf16 operands with f32 accumulation: slightly widened tolerance.
    assert bool(jnp.allclose(y, y_ref, atol=3e-2, rtol=3e-2))
    print("KERNEL_OK")
</pallas_src>

<mosaic_0001>
module attributes {stable_mosaic.version = 11 : i64} {
  func.func @_downsample_mm_kernel(%arg0: i32, %arg1: i32, %arg2: memref<8x128xbf16, #tpu.memory_space<vmem>>, %arg3: memref<128x128xbf16, #tpu.memory_space<vmem>>, %arg4: memref<8x1xf32, #tpu.memory_space<vmem>>, %arg5: memref<8x128xf32, #tpu.memory_space<vmem>>, %arg6: memref<8x128xf32, #tpu.memory_space<vmem>>) attributes {dimension_semantics = [#tpu.dimension_semantics<parallel>, #tpu.dimension_semantics<arbitrary>], iteration_bounds = array<i64: 1, 1>, scalar_prefetch = 0 : i64, scratch_operands = 1 : i64, tpu.core_type = #tpu.core_type<tc>, window_params = [{transform_indices = @transform_0, window_bounds = array<i64: 8, 128>}, {transform_indices = @transform_1, window_bounds = array<i64: 128, 128>}, {pipeline_mode = #tpu.pipeline_mode<synchronous>, transform_indices = @transform_2, window_bounds = array<i64: 8, 1>}, {transform_indices = @transform_3, window_bounds = array<i64: 8, 128>}]} {
    %c0_i32 = arith.constant 0 : i32
    %0 = arith.cmpi eq, %arg1, %c0_i32 : i32
    %1 = arith.extui %0 : i1 to i32
    %c0_i32_0 = arith.constant 0 : i32
    %2 = arith.cmpi ne, %1, %c0_i32_0 : i32
    scf.if %2 {
      %cst_10 = arith.constant 0.000000e+00 : f32
      %12 = vector.broadcast %cst_10 : f32 to vector<8x128xf32>
      %c0_11 = arith.constant 0 : index
      %c0_12 = arith.constant 0 : index
      %13 = vector.load %arg6[%c0_11, %c0_12] : memref<8x128xf32, #tpu.memory_space<vmem>>, vector<8x128xf32>
      tpu.vector_store %arg6[%c0_11, %c0_12], %12 {strides = array<i32>} : memref<8x128xf32, #tpu.memory_space<vmem>>, vector<8x128xf32>,
    } else {
    }
    %c0 = arith.constant 0 : index
    %c0_1 = arith.constant 0 : index
    %3 = vector.load %arg6[%c0, %c0_1] : memref<8x128xf32, #tpu.memory_space<vmem>>, vector<8x128xf32>
    %c0_2 = arith.constant 0 : index
    %c0_3 = arith.constant 0 : index
    %4 = vector.load %arg2[%c0_2, %c0_3] : memref<8x128xbf16, #tpu.memory_space<vmem>>, vector<8x128xbf16>
    %c0_4 = arith.constant 0 : index
    %c0_5 = arith.constant 0 : index
    %5 = vector.load %arg3[%c0_4, %c0_5] : memref<128x128xbf16, #tpu.memory_space<vmem>>, vector<128x128xbf16>
    %cst = arith.constant dense<0.000000e+00> : vector<8x128xf32>
    %6 = tpu.matmul %4, %5, %cst {dimension_numbers = #tpu.dot_dimension_numbers<[1], [0], [0], [1], [0, 0, 1, 1], [], []>} : vector<8x128xbf16>, vector<128x128xbf16>, vector<8x128xf32> -> vector<8x128xf32>
    %7 = arith.addf %3, %6 : vector<8x128xf32>
    %c0_6 = arith.constant 0 : index
    %c0_7 = arith.constant 0 : index
    %8 = vector.load %arg6[%c0_6, %c0_7] : memref<8x128xf32, #tpu.memory_space<vmem>>, vector<8x128xf32>
    tpu.vector_store %arg6[%c0_6, %c0_7], %7 {strides = array<i32>} : memref<8x128xf32, #tpu.memory_space<vmem>>, vector<8x128xf32>,
    %c0_i32_8 = arith.constant 0 : i32
    %9 = arith.cmpi eq, %arg1, %c0_i32_8 : i32
    %10 = arith.extui %9 : i1 to i32
    %c0_i32_9 = arith.constant 0 : i32
    %11 = arith.cmpi ne, %10, %c0_i32_9 : i32
    scf.if %11 {
      %c0_10 = arith.constant 0 : index
      %c0_11 = arith.constant 0 : index
      %12 = vector.load %arg6[%c0_10, %c0_11] : memref<8x128xf32, #tpu.memory_space<vmem>>, vector<8x128xf32>
      %c0_12 = arith.constant 0 : index
      %c0_13 = arith.constant 0 : index
      %13 = vector.load %arg4[%c0_12, %c0_13] : memref<8x1xf32, #tpu.memory_space<vmem>>, vector<8x1xf32>
      %14 = vector.broadcast %13 : vector<8x1xf32> to vector<8x128xf32>
      %15 = arith.addf %12, %14 : vector<8x128xf32>
      %c0_14 = arith.constant 0 : index
      %c0_15 = arith.constant 0 : index
      %16 = vector.load %arg5[%c0_14, %c0_15] : memref<8x128xf32, #tpu.memory_space<vmem>>, vector<8x128xf32>
      tpu.vector_store %arg5[%c0_14, %c0_15], %15 {strides = array<i32>} : memref<8x128xf32, #tpu.memory_space<vmem>>, vector<8x128xf32>,
    } else {
    }
    return
  }
  func.func @transform_0(%arg0: i32, %arg1: i32) -> (i32, i32) {
    %c0_i32 = arith.constant 0 : i32
    %c0_i32_0 = arith.constant 0 : i32
    return %c0_i32, %arg1 : i32, i32
  }
  func.func @transform_1(%arg0: i32, %arg1: i32) -> (i32, i32) {
    %c0_i32 = arith.constant 0 : i32
    return %arg1, %arg0 : i32, i32
  }
  func.func @transform_2(%arg0: i32, %arg1: i32) -> (i32, i32) {
    %c0_i32 = arith.constant 0 : i32
    %c0_i32_0 = arith.constant 0 : i32
    %c0_i32_1 = arith.constant 0 : i32
    return %c0_i32, %c0_i32_0 : i32, i32
  }
  func.func @transform_3(%arg0: i32, %arg1: i32) -> (i32, i32) {
    %c0_i32 = arith.constant 0 : i32
    %c0_i32_0 = arith.constant 0 : i32
    return %c0_i32, %arg0 : i32, i32
  }
}

</mosaic_0001>

<bundles_post_ra>
// kernel: _lambda_.1
= control target key start
LH: loop header
LB: loop body
LE: loop exit
PB: predicated region body
PF: predicated region fallthrough
CT: control target
= control target key end

     0   :  { %v193_v0 = vmov 0.0   ;;  %vm194_vm0 = vmmov 0   ;;  %v195_v2 = vmov 0   ;;  %s249_s1 = inlined_call_operand.vmem [shape: bf16[128,128], index: 1, kind: input, shape index: {}]   ;;  %s250_s2 = inlined_call_operand.vmem [shape: f32[8,1], index: 2, kind: input, shape index: {}]   ;;  %s251_s0 = inlined_call_operand.vmem [shape: bf16[8,128], index: 0, kind: input, shape index: {}]   ;;  %s252_s3 = inlined_call_operand.vmem [shape: f32[8,128], index: 3, kind: output, shape index: {}]  }
   0x1   :  { %161 = vmatprep.subr.bf16.mxu0 %v193_v0  ;;  %v185_v1 = vld [vmem:[%s249_s1] sm:$0xff]   ;;  %177 = vmatprep.mubr.msk.bf16.mxu0 %vm194_vm0, %v193_v0  ;;  %v186_v3 = vld [vmem:[%s249_s1 + $0x8] sm:$0xff]   ;;  %v187_v4 = vld [vmem:[%s249_s1 + $0x10] sm:$0xff]  }
   0x2   :  { %184 = vset.pattern.permute.xlu0 %v195_v2  ;;  %162 = vmatpush3.bf16.msra.mxu0 %v185_v1  ;;  %v132_v5 = vld [vmem:[%s250_s2] sm:$0xff]  ;;  %v188_v6 = vld [vmem:[%s249_s1 + $0x18] sm:$0xff]   ;;  %v190_v8 = vld [vmem:[%s249_s1 + $0x28] sm:$0xff]  }
   0x3   :  { %163 = vmatprep.subr.bf16.mxu0 %v193_v0  ;;  %135 = vperm.xlu0 %184, %v132_v5   ;;  %v189_v7 = vld [vmem:[%s249_s1 + $0x20] sm:$0xff]   ;;  %v191_v9 = vld [vmem:[%s249_s1 + $0x30] sm:$0xff]   ;;  %v192_v10 = vld [vmem:[%s249_s1 + $0x38] sm:$0xff]  }
   0x4   :  { %v21_v11 = vld [vmem:[%s251_s0] sm:$0xf] }
   0x6   :  { %164 = vmatpush3.bf16.msra.mxu0 %v186_v3 }
   0x7   :  { %165 = vmatprep.subr.bf16.mxu0 %v193_v0 }
   0xa   :  { %166 = vmatpush3.bf16.msra.mxu0 %v187_v4 }
   0xb   :  { %167 = vmatprep.subr.bf16.mxu0 %v193_v0 }
   0xe   :  { %168 = vmatpush3.bf16.msra.mxu0 %v188_v6 }
   0xf   :  { %169 = vmatprep.subr.bf16.mxu0 %v193_v0 }
  0x12   :  { %170 = vmatpush3.bf16.msra.mxu0 %v189_v7 }
  0x13   :  { %171 = vmatprep.subr.bf16.mxu0 %v193_v0 }
  0x16   :  { %172 = vmatpush3.bf16.msra.mxu0 %v190_v8 }
  0x17   :  { %173 = vmatprep.subr.bf16.mxu0 %v193_v0 }
  0x1a   :  { %174 = vmatpush3.bf16.msra.mxu0 %v191_v9 }
  0x1b   :  { %175 = vmatprep.subr.bf16.mxu0 %v193_v0 }
  0x1e   :  { %176 = vmatpush3.bf16.msra.mxu0 %v192_v10 }
  0x21   :  { %178 = vmatmul.mubr.bf16.vlgmr.msra.gmra.mrb[0].mxu0 %v21_v11 }
  0x82   :  { %v136_v12 = vpop.permute.xlu0 %135 }
  0xf4   :  { %v120_v13 = vpop.f32.mrb[0].mxu0 }
  0xf5   :  { %v138_v14 = vadd.f32 %v136_v12, %v120_v13  ;;  %v179_v15 = vpop.f32.mrb[1].mxu0 }
  0xf6   :  { %v123_v16 = vpop.f32.mrb[2].mxu0 }
  0xf7   :  { %139 = vst [vmem:[%s252_s3] sm:$0xff] %v138_v14  ;;  %v180_v17 = vpop.f32.mrb[3].mxu0 }

</bundles_post_ra>
